<compile_context>
chip_gen: v6e
topology: v6e:2x2x1
jax: 0.10.0
libtpu: 0.0.40
codegen_flags: <defaults>
</compile_context>

<pallas_src>
import functools
import inspect

import jax
import jax.numpy as jnp
from jax import lax
from jax.experimental import pallas as pl
from jax.experimental.pallas import tpu as pltpu


# --------------------------- tiling / call helpers ---------------------------

_VMEM_BUDGET_BYTES = 12 * 1024 * 1024   # fits v5e's 16 MiB default scoped VMEM
_MAX_TILE_ROWS = 1024

_PALLAS_CALL_PARAMS = set(inspect.signature(pl.pallas_call).parameters)


def _row_tile(n_rows, hidden, itemsize, n_buffered_arrays,
              vmem_budget=_VMEM_BUDGET_BYTES, max_rows=_MAX_TILE_ROWS):
    """Largest sublane-aligned row tile whose double-buffered blocks fit VMEM."""
    bytes_per_row = 2 * n_buffered_arrays * hidden * itemsize   # x2: double buffer
    tile = vmem_budget // max(bytes_per_row, 1)
    tile = min(int(tile), max_rows)
    if tile >= n_rows:
        return int(n_rows)                 # full-dim block is always legal
    return max(8, (tile // 8) * 8)         # (8, 128) sublane alignment


def _tpu_compiler_params():
    cp_cls = getattr(pltpu, "CompilerParams", None) or getattr(pltpu, "TPUCompilerParams", None)
    if cp_cls is None:
        return None
    try:
        return cp_cls(dimension_semantics=("parallel",))
    except TypeError:
        return None


def _extra_call_kwargs(flops, transcendentals, bytes_accessed):
    kw = {}
    cp = _tpu_compiler_params()
    if cp is not None and "compiler_params" in _PALLAS_CALL_PARAMS:
        kw["compiler_params"] = cp
    ce_cls = getattr(pl, "CostEstimate", None)
    if ce_cls is not None and "cost_estimate" in _PALLAS_CALL_PARAMS:
        kw["cost_estimate"] = ce_cls(flops=int(flops),
                                     transcendentals=int(transcendentals),
                                     bytes_accessed=int(bytes_accessed))
    return kw


# ----------------------------- LayerNorm kernel ------------------------------

def _layernorm_kernel(x_ref, g_ref, b_ref, o_ref, *, eps, inv_h):
    x = x_ref[...].astype(jnp.float32)
    # One-pass statistics: single sweep for sum and sum-of-squares.
    s1 = jnp.sum(x, axis=-1, keepdims=True)
    s2 = jnp.sum(x * x, axis=-1, keepdims=True)
    mean = s1 * inv_h
    var = s2 * inv_h - mean * mean
    inv = lax.rsqrt(var + eps)
    g = g_ref[...].astype(jnp.float32)
    b = b_ref[...].astype(jnp.float32)
    o_ref[...] = ((x - mean) * inv * g + b).astype(o_ref.dtype)


def layernorm_pallas(x2d, gamma, beta, *, eps=1e-5):
    n, h = x2d.shape
    itemsize = jnp.dtype(x2d.dtype).itemsize
    tile = _row_tile(n, h, itemsize, n_buffered_arrays=2)      # x block + out block
    grid = (pl.cdiv(n, tile),)
    extra = _extra_call_kwargs(
        flops=8 * n * h, transcendentals=n,
        bytes_accessed=2 * n * h * itemsize + 2 * h * 4)
    return pl.pallas_call(
        functools.partial(_layernorm_kernel, eps=float(eps), inv_h=1.0 / float(h)),
        out_shape=jax.ShapeDtypeStruct((n, h), x2d.dtype),
        grid=grid,
        in_specs=[
            pl.BlockSpec((tile, h), lambda i: (i, 0)),
            pl.BlockSpec((1, h), lambda i: (0, 0)),
            pl.BlockSpec((1, h), lambda i: (0, 0)),
        ],
        out_specs=pl.BlockSpec((tile, h), lambda i: (i, 0)),
        **extra,
    )(x2d, gamma.reshape(1, h), beta.reshape(1, h))


# ----------------------- residual add (+ dropout) kernels ---------------------

def _residual_add_kernel(x_ref, y_ref, o_ref):
    x = x_ref[...].astype(jnp.float32)
    y = y_ref[...].astype(jnp.float32)
    o_ref[...] = (x + y).astype(o_ref.dtype)


def _residual_add_dropout_kernel(x_ref, y_ref, u_ref, o_ref, *, p):
    x = x_ref[...].astype(jnp.float32)
    y = y_ref[...].astype(jnp.float32)
    scale = jnp.float32(1.0 / (1.0 - p))
    # Single select with the inverted-dropout scale folded in.
    kept = jnp.where(u_ref[...] >= p, y * scale, jnp.float32(0.0))
    o_ref[...] = (x + kept).astype(o_ref.dtype)


def residual_add_pallas(x2d, y2d):
    n, h = x2d.shape
    itemsize = jnp.dtype(x2d.dtype).itemsize
    tile = _row_tile(n, h, itemsize, n_buffered_arrays=3)      # x, y, out
    grid = (pl.cdiv(n, tile),)
    extra = _extra_call_kwargs(flops=n * h, transcendentals=0,
                               bytes_accessed=3 * n * h * itemsize)
    return pl.pallas_call(
        _residual_add_kernel,
        out_shape=jax.ShapeDtypeStruct((n, h), x2d.dtype),
        grid=grid,
        in_specs=[
            pl.BlockSpec((tile, h), lambda i: (i, 0)),
            pl.BlockSpec((tile, h), lambda i: (i, 0)),
        ],
        out_specs=pl.BlockSpec((tile, h), lambda i: (i, 0)),
        input_output_aliases={0: 0},        # x is dead after the residual add
        **extra,
    )(x2d, y2d)


def residual_add_dropout_pallas(x2d, y2d, u2d, *, p):
    n, h = x2d.shape
    itemsize = jnp.dtype(x2d.dtype).itemsize
    tile = _row_tile(n, h, itemsize, n_buffered_arrays=4)      # x, y, u, out
    grid = (pl.cdiv(n, tile),)
    extra = _extra_call_kwargs(flops=3 * n * h, transcendentals=0,
                               bytes_accessed=3 * n * h * itemsize + n * h * 4)
    return pl.pallas_call(
        functools.partial(_residual_add_dropout_kernel, p=float(p)),
        out_shape=jax.ShapeDtypeStruct((n, h), x2d.dtype),
        grid=grid,
        in_specs=[
            pl.BlockSpec((tile, h), lambda i: (i, 0)),
            pl.BlockSpec((tile, h), lambda i: (i, 0)),
            pl.BlockSpec((tile, h), lambda i: (i, 0)),
        ],
        out_specs=pl.BlockSpec((tile, h), lambda i: (i, 0)),
        input_output_aliases={0: 0},        # x is dead after the residual add
        **extra,
    )(x2d, y2d, u2d)


# ---------------------------------- AddNorm -----------------------------------

def add_norm(x, sublayer_fn, gamma, beta, *,
             dropout_p=0.1, training=False, rng_key=None, eps=1e-5):
    """x + dropout(sublayer(LayerNorm(x)))  — same semantics as the torch module."""
    orig_shape = x.shape
    h = orig_shape[-1]
    x2d = x.reshape(-1, h)

    normed = layernorm_pallas(x2d, gamma, beta, eps=eps).reshape(orig_shape)
    sub2d = sublayer_fn(normed).reshape(-1, h)   # arbitrary sublayer: plain JAX glue

    if training and dropout_p > 0.0:
        if dropout_p >= 1.0:
            return x                              # everything dropped -> pure residual
        if rng_key is None:
            rng_key = jax.random.PRNGKey(0)
        # Uniform randoms from jax.random (same distribution/scaling as torch
        # dropout, not bit-identical RNG stream); kernel applies keep + scale.
        u2d = jax.random.uniform(rng_key, x2d.shape, dtype=jnp.float32)
        out2d = residual_add_dropout_pallas(x2d, sub2d, u2d, p=float(dropout_p))
    else:
        out2d = residual_add_pallas(x2d, sub2d)
    return out2d.reshape(orig_shape)


# ------------------------------- example / test -------------------------------

if __name__ == "__main__":
    B, S, H = 2, 8, 32   # batch=2, seq=8, hidden=32  (LayerNorm size = 32)

    key = jax.random.PRNGKey(0)
    kx, kw, kb, kd = jax.random.split(key, 4)
    x = jax.random.normal(kx, (B, S, H), dtype=jnp.float32)

    # nn.LayerNorm(size) parameters: weight=ones, bias=zeros.
    gamma = jnp.ones((H,), dtype=jnp.float32)
    beta = jnp.zeros((H,), dtype=jnp.float32)

    # A simple deterministic sublayer (a linear projection), as plain JAX.
    W = jax.random.normal(kw, (H, H), dtype=jnp.float32) * 0.05
    bvec = jax.random.normal(kb, (H,), dtype=jnp.float32) * 0.01

    def sublayer(z):
        return jnp.einsum("bsh,hk->bsk", z, W) + bvec

    # ---- eval mode (dropout is identity, like torch .eval()) ----
    out = add_norm(x, sublayer, gamma, beta, dropout_p=0.1, training=False)
    out = jax.block_until_ready(out)

    # Pure-JAX reference.
    mean = jnp.mean(x, axis=-1, keepdims=True)
    var = jnp.mean((x - mean) ** 2, axis=-1, keepdims=True)
    normed_ref = (x - mean) * lax.rsqrt(var + 1e-5) * gamma + beta
    ref = x + sublayer(normed_ref)

    assert out.shape == x.shape and out.dtype == x.dtype
    assert jnp.allclose(out, ref, atol=1e-4, rtol=1e-4), "eval-mode mismatch vs reference"

    # ---- training mode (dropout active; same mask reproduced for the reference) ----
    p = 0.1
    out_tr = add_norm(x, sublayer, gamma, beta, dropout_p=p, training=True, rng_key=kd)
    out_tr = jax.block_until_ready(out_tr)

    u = jax.random.uniform(kd, (B * S, H), dtype=jnp.float32).reshape(B, S, H)
    ref_tr = x + jnp.where(u >= p, sublayer(normed_ref) / (1.0 - p), 0.0)
    assert jnp.allclose(out_tr, ref_tr, atol=1e-4, rtol=1e-4), "train-mode mismatch vs reference"

    print("KERNEL_OK")
</pallas_src>

<mosaic_0001>
module attributes {stable_mosaic.version = 11 : i64} {
  func.func @_layernorm_kernel(%arg0: i32, %arg1: memref<16x32xf32, #tpu.memory_space<vmem>>, %arg2: memref<1x32xf32, #tpu.memory_space<vmem>>, %arg3: memref<1x32xf32, #tpu.memory_space<vmem>>, %arg4: memref<16x32xf32, #tpu.memory_space<vmem>>) attributes {dimension_semantics = [#tpu.dimension_semantics<parallel>], iteration_bounds = array<i64: 1>, scalar_prefetch = 0 : i64, scratch_operands = 0 : i64, tpu.core_type = #tpu.core_type<tc>, window_params = [{transform_indices = @transform_0, window_bounds = array<i64: 16, 32>}, {pipeline_mode = #tpu.pipeline_mode<synchronous>, transform_indices = @transform_1, window_bounds = array<i64: 1, 32>}, {pipeline_mode = #tpu.pipeline_mode<synchronous>, transform_indices = @transform_2, window_bounds = array<i64: 1, 32>}, {transform_indices = @transform_3, window_bounds = array<i64: 16, 32>}]} {
    %c0 = arith.constant 0 : index
    %c0_0 = arith.constant 0 : index
    %0 = vector.load %arg1[%c0, %c0_0] : memref<16x32xf32, #tpu.memory_space<vmem>>, vector<16x32xf32>
    %cst = arith.constant dense<0.000000e+00> : vector<16xf32>
    %1 = vector.multi_reduction <add>, %0, %cst [1] : vector<16x32xf32> to vector<16xf32>
    %2 = vector.shape_cast %1 : vector<16xf32> to vector<16x1xf32>
    %3 = arith.mulf %0, %0 : vector<16x32xf32>
    %cst_1 = arith.constant dense<0.000000e+00> : vector<16xf32>
    %4 = vector.multi_reduction <add>, %3, %cst_1 [1] : vector<16x32xf32> to vector<16xf32>
    %5 = vector.shape_cast %4 : vector<16xf32> to vector<16x1xf32>
    %cst_2 = arith.constant 3.125000e-02 : f32
    %6 = vector.broadcast %cst_2 : f32 to vector<16x1xf32>
    %7 = arith.mulf %2, %6 : vector<16x1xf32>
    %cst_3 = arith.constant 3.125000e-02 : f32
    %8 = vector.broadcast %cst_3 : f32 to vector<16x1xf32>
    %9 = arith.mulf %5, %8 : vector<16x1xf32>
    %10 = arith.mulf %7, %7 : vector<16x1xf32>
    %11 = arith.subf %9, %10 : vector<16x1xf32>
    %cst_4 = arith.constant 9.99999974E-6 : f32
    %12 = vector.broadcast %cst_4 : f32 to vector<16x1xf32>
    %13 = arith.addf %11, %12 : vector<16x1xf32>
    %14 = math.rsqrt %13 : vector<16x1xf32>
    %c0_5 = arith.constant 0 : index
    %c0_6 = arith.constant 0 : index
    %15 = vector.load %arg2[%c0_5, %c0_6] : memref<1x32xf32, #tpu.memory_space<vmem>>, vector<1x32xf32>
    %c0_7 = arith.constant 0 : index
    %c0_8 = arith.constant 0 : index
    %16 = vector.load %arg3[%c0_7, %c0_8] : memref<1x32xf32, #tpu.memory_space<vmem>>, vector<1x32xf32>
    %17 = vector.broadcast %7 : vector<16x1xf32> to vector<16x32xf32>
    %18 = arith.subf %0, %17 : vector<16x32xf32>
    %19 = vector.broadcast %14 : vector<16x1xf32> to vector<16x32xf32>
    %20 = arith.mulf %18, %19 : vector<16x32xf32>
    %21 = vector.broadcast %15 : vector<1x32xf32> to vector<16x32xf32>
    %22 = arith.mulf %20, %21 : vector<16x32xf32>
    %23 = vector.broadcast %16 : vector<1x32xf32> to vector<16x32xf32>
    %24 = arith.addf %22, %23 : vector<16x32xf32>
    %c0_9 = arith.constant 0 : index
    %c0_10 = arith.constant 0 : index
    %25 = vector.load %arg4[%c0_9, %c0_10] : memref<16x32xf32, #tpu.memory_space<vmem>>, vector<16x32xf32>
    tpu.vector_store %arg4[%c0_9, %c0_10], %24 {strides = array<i32>} : memref<16x32xf32, #tpu.memory_space<vmem>>, vector<16x32xf32>,
    return
  }
  func.func @transform_0(%arg0: i32) -> (i32, i32) {
    %c0_i32 = arith.constant 0 : i32
    %c0_i32_0 = arith.constant 0 : i32
    return %arg0, %c0_i32 : i32, i32
  }
  func.func @transform_1(%arg0: i32) -> (i32, i32) {
    %c0_i32 = arith.constant 0 : i32
    %c0_i32_0 = arith.constant 0 : i32
    %c0_i32_1 = arith.constant 0 : i32
    return %c0_i32, %c0_i32_0 : i32, i32
  }
  func.func @transform_2(%arg0: i32) -> (i32, i32) {
    %c0_i32 = arith.constant 0 : i32
    %c0_i32_0 = arith.constant 0 : i32
    %c0_i32_1 = arith.constant 0 : i32
    return %c0_i32, %c0_i32_0 : i32, i32
  }
  func.func @transform_3(%arg0: i32) -> (i32, i32) {
    %c0_i32 = arith.constant 0 : i32
    %c0_i32_0 = arith.constant 0 : i32
    return %arg0, %c0_i32 : i32, i32
  }
}

</mosaic_0001>

<bundles_post_ra>
// kernel: tpu_custom_call.1
= control target key start
LH: loop header
LB: loop body
LE: loop exit
PB: predicated region body
PF: predicated region fallthrough
CT: control target
= control target key end

     0   :  { %8 = vsyncpa [#allocation3], 0  ;;  %s201_s0 = inlined_call_operand.hbm [shape: f32[16,32], index: 0, kind: input, shape index: {}]   ;;  %s202_s1 = inlined_call_operand.vmem [shape: f32[1,32], index: 1, kind: input, shape index: {}]   ;;  %s203_s2 = inlined_call_operand.vmem [shape: f32[1,32], index: 2, kind: input, shape index: {}]   ;;  %s204_s3 = inlined_call_operand.hbm [shape: f32[16,32], index: 3, kind: output, shape index: {}]  }
   0x1   :  { %9 = vsyncpa [#allocation4], 0  ;;  %s153_s12 = smov [#allocation2]  }
   0x2   :  { %s15_s13 = sshll.u32 %s153_s12, 4  ;;  %s16_s13 = int_to_ptr.vmem [resolvable:$true] %s15_s13 }
   0x3   :  { %s117_s14 = scalar_lea.vmem %s16_s13, 256  ;;  %p122_p1 = scmp.lt.s32.totalorder %s16_s13, %s16_s13 }
   0x4   :  { %p118_p0 = scmp.ne.s32.totalorder %s16_s13, %s117_s14  ;;  %p123_p2 = scmp.lt.s32.totalorder %s117_s14, %s117_s14 }
   0x6   :  { %p124_p3 = por %p123_p2, %p122_p1 }
   0x8   :  { %p125_p4 = pnand %p124_p3, %p118_p0 }
   0xa   :  { %128 = shalt.err (!%p125_p4)
}
   0xb   :  { %s154_s15 = smov 128   ;;  %s155_s16 = smov 8  }
   0xc   :  { %21 = dma.hbm_to_vmem [thread:$0]  %s201_s0, 256, %s16_s13, [#allocation3], %s154_s15, %s154_s15, %s155_s16  }
   0xd   :  { %149 = dma.done.wait [#allocation3], 256  }
   0xe   :  { %150 = vsyncadd [#allocation3], 4294967040  ;;  %vm31_vm0 = vcmask 261120   ;;  %v29_v0 = vld [vmem:[#allocation2] sm:$0xff]  ;;  %v30_v1 = vld [vmem:[#allocation2 + $0x8] sm:$0xff]  ;;  %s156_s22 = smov [#allocation5]  }
   0xf   :  { %v32_v2 = vsel %vm31_vm0, %v29_v0, 0.0  ;;  %v38_v3 = vmul.f32 %v29_v0, %v29_v0  ;;  %v39_v4 = vmul.f32 %v30_v1, %v30_v1  ;;  %v35_v6 = vsel %vm31_vm0, %v30_v1, 0.0  ;;  %v99_v24 = vld [vmem:[%s202_s1] ss:$0 sm:$0xff]  ;;  %s87_s23 = sshll.u32 %s156_s22, 4  ;;  %s88_s23 = int_to_ptr.vmem [resolvable:$true] %s87_s23 }
  0x10   :  { %33 = vadd.xlane.f32.xlu0 %v32_v2  ;;  %v100_v26 = vld [vmem:[%s203_s2] ss:$0 sm:$0xff]  ;;  %s129_s1 = scalar_lea.vmem %s88_s23, 256  ;;  %p134_p6 = scmp.lt.s32.totalorder %s88_s23, %s88_s23 }
  0x11   :  { %v40_v5 = vsel %vm31_vm0, %v38_v3, 0.0  ;;  %v43_v7 = vsel %vm31_vm0, %v39_v4, 0.0  ;;  %p130_p5 = scmp.ne.s32.totalorder %s88_s23, %s129_s1  ;;  %p135_p7 = scmp.lt.s32.totalorder %s129_s1, %s129_s1 }
  0x12   :  { %41 = vadd.xlane.f32.xlu1 %v40_v5 }
  0x13   :  { %p136_p8 = por %p135_p7, %p134_p6 }
  0x14   :  { %36 = vadd.xlane.f32.xlu0 %v35_v6 }
  0x15   :  { %p137_p9 = pnand %p136_p8, %p130_p5 }
  0x16   :  { %44 = vadd.xlane.f32.xlu1 %v43_v7 }
  0x99   :  { %v34_v8 = vpop.xlane.xlu0 %33 }
  0x9a   :  { %v46_v9 = vmul.f32 0.03125, %v34_v8 }
  0x9b   :  { %v42_v10 = vpop.xlane.xlu1 %41 }
  0x9c   :  { %v50_v11 = vmul.f32 %v46_v9, %v46_v9  ;;  %v48_v12 = vmul.f32 0.03125, %v42_v10  ;;  %v60_v22 = vsub.f32 %v29_v0, %v46_v9 }
  0x9d   :  { %v37_v13 = vpop.xlane.xlu0 %36 }
  0x9e   :  { %v52_v14 = vsub.f32 %v48_v12, %v50_v11  ;;  %v47_v15 = vmul.f32 0.03125, %v37_v13 }
  0x9f   :  { %v45_v16 = vpop.xlane.xlu1 %44 }
  0xa0   :  { %v54_v17 = vadd.f32 1e-05, %v52_v14  ;;  %v51_v18 = vmul.f32 %v47_v15, %v47_v15  ;;  %v49_v19 = vmul.f32 0.03125, %v45_v16  ;;  %v61_v27 = vsub.f32 %v30_v1, %v47_v15 }
  0xa2   :  { %105 = vrsqrt.f32 %v54_v17  ;;  %v53_v20 = vsub.f32 %v49_v19, %v51_v18 }
  0xa4   :  { %v55_v21 = vadd.f32 1e-05, %v53_v20 }
  0xa6   :  { %107 = vrsqrt.f32 %v55_v21 }
  0xaf   :  { %v106_v23 = vpop.eup %105 }
  0xb0   :  { %v62_v25 = vmul.f32 %v106_v23, %v60_v22 }
  0xb2   :  { %v70_v28 = vmul.f32 %v99_v24, %v62_v25 }
  0xb3   :  { %v108_v29 = vpop.eup %107 }
  0xb4   :  { %v63_v30 = vmul.f32 %v108_v29, %v61_v27  ;;  %v78_v31 = vadd.f32 %v100_v26, %v70_v28 }
  0xb6   :  { %v71_v32 = vmul.f32 %v99_v24, %v63_v30  ;;  %80 = vst.msk [vmem:[#allocation5] sm:$0xff] %vm31_vm0, %v78_v31 }
  0xb8   :  { %v79_v33 = vadd.f32 %v100_v26, %v71_v32 }
  0xba   :  { %81 = vst.msk [vmem:[#allocation5 + $0x8] sm:$0xff] %vm31_vm0, %v79_v33 }
  0xbb   :  { %140 = shalt.err (!%p137_p9)
}
  0xbc   :  { %93 = dma.vmem_to_hbm [thread:$0]  %s88_s23, 256, %s204_s3, [#allocation4], %s154_s15, %s154_s15, %s155_s16  }
  0xbd   :  { %151 = dma.done.wait [#allocation4], 256  }
  0xbe   :  { %152 = vsyncadd [#allocation4], 4294967040 }
  0xbf   :  { %97 = vsyncpa [#allocation3], 1 }
  0xc0   :  { %98 = vsyncpa [#allocation4], 1 }

</bundles_post_ra>
